<compile_context>
chip_gen: v7x
topology: tpu7x:2x2x1
jax: 0.10.0
libtpu: 0.0.40
codegen_flags: <defaults>
</compile_context>

<pallas_src>
import math

import jax
import jax.numpy as jnp
from jax.experimental import pallas as pl
from jax.experimental.pallas import tpu as pltpu

EPS = 1e-9


def din_attention_kernel(q_ref, k_ref, m_ref, w1_ref, w2_ref, vec_ref, out_ref):
    TB, S, H = k_ref.shape
    bf16 = jnp.bfloat16

    q = q_ref[...]                                    # (TB, H)    f32
    k = k_ref[...]                                    # (TB, S, H) bf16 (streamed)

    vecs = vec_ref[...]                               # (8, D) packed per-feature params
    b1, b2 = vecs[0:1, :], vecs[1:2, :]
    alphas, one_m_alphas = vecs[2:3, :], vecs[3:4, :]
    bn_scale, bn_shift = vecs[4:5, :], vecs[5:6, :]
    wo_row = vecs[6:7, :]

    def dice(x):                                      # x: (M, D) f32
        xp = jax.nn.sigmoid(x * bn_scale + bn_shift)  # EUP slot
        return x * (alphas + one_m_alphas * xp)       # (1 - alpha) prefolded in vecs

    # --- din = [q, k, q-k, q*k] built in bf16 -> one lane-dense K=4H MXU push ----
    qe = jnp.broadcast_to(q.astype(bf16)[:, None, :], (TB, S, H))
    din = jnp.concatenate([qe, k, qe - k, qe * k], axis=-1)        # (TB, S, 4H) bf16
    din2d = din.reshape(TB * S, 4 * H)

    y = jnp.dot(din2d, w1_ref[...], preferred_element_type=jnp.float32) + b1
    y = dice(y)
    y = jnp.dot(y.astype(bf16), w2_ref[...], preferred_element_type=jnp.float32) + b2
    y = dice(y)

    # --- output Linear (N=1) as a lane reduce; bo dropped (softmax shift
    #     invariance over unmasked positions makes it a no-op) --------------------
    scores = jnp.sum(y * wo_row, axis=-1, keepdims=True).reshape(TB, S)

    # --- mask (one packed bit-word per row), scale, softmax over S ---------------
    # TODO(synk): F.softmax is called without dim= in the original module; the
    # intended DIN semantics (softmax over S) is what is implemented here.
    bits = m_ref[...]                                              # (TB, 1) int32
    pos = jax.lax.broadcasted_iota(jnp.int32, (TB, S), 1)
    valid = (jnp.right_shift(bits, pos) & 1) > 0                   # exact 0/1 mask
    scores = jnp.where(valid, scores, jnp.full_like(scores, -1e12))
    scores = scores * (1.0 / math.sqrt(H))
    scores = scores - jnp.max(scores, axis=-1, keepdims=True)
    p = jnp.exp(scores)
    p = p * pl.reciprocal(jnp.sum(p, axis=-1, keepdims=True), approx=True)

    # --- weighted sum of keys (f32 p * bf16 k promotes to f32) -------------------
    out = jnp.sum(p[:, :, None] * k, axis=1)                       # (TB, H) f32
    out_ref[...] = out.astype(out_ref.dtype)


def _round_up(x, m):
    return ((x + m - 1) // m) * m


def din_attention(queries, keys, mask, params, *, block_b=1024):
    """params = (w1, b1, w2, b2, wo, bo, alphas, bn_gamma, bn_beta, bn_mean, bn_var)."""
    B, H = queries.shape
    _, S, _ = keys.shape
    w1, b1, w2, b2, wo, bo, alphas, bn_gamma, bn_beta, bn_mean, bn_var = params
    del bo  # uniform pre-mask scalar shift -> softmax no-op; not passed to the kernel
    D0, D1 = w1.shape[1], w2.shape[1]
    assert D0 == D1 == H, "shared DICE(hidden_size) requires equal layer widths"
    D = D0
    # TODO(synk): for S > 31, ship the (B, S) mask tensor (or multiple bit-words)
    # instead of one packed int32 word per row.
    assert S <= 31, "packed-bitmask path assumes S <= 31"

    # bf16 MXU weights (one-time transform; folds to constants under jit).
    w1b = w1.astype(jnp.bfloat16)                      # (4H, D): K = 4H lane-dense
    w2b = w2.astype(jnp.bfloat16)                      # (D, D)

    # Keys dominate HBM traffic -> stream them as bf16 (halves the bytes).
    keys_b = keys.astype(jnp.bfloat16)

    # Inference-mode BatchNorm folded into per-feature affine scale/shift.
    bn_scale = bn_gamma / jnp.sqrt(bn_var + EPS)
    bn_shift = bn_beta - bn_mean * bn_scale

    # Pack all small per-feature vectors into a single (8, D) block: one padded
    # tile + one DMA instead of six.
    flat = lambda v: jnp.asarray(v, jnp.float32).reshape(-1)
    vecs = jnp.stack([flat(b1), flat(b2), flat(alphas), 1.0 - flat(alphas),
                      flat(bn_scale), flat(bn_shift), flat(wo),
                      jnp.zeros((D,), jnp.float32)], axis=0)

    # (B, S) 0/1 mask packed exactly into one int32 word per row (any mask pattern).
    powers = (1 << jnp.arange(S, dtype=jnp.int32))[None, :]
    mask_bits = jnp.sum((mask > 0.5).astype(jnp.int32) * powers,
                        axis=-1, keepdims=True)        # (B, 1) int32

    # --- batch-tile selection ----------------------------------------------------
    # tb is a multiple of 8 (sublane rule) and as large as the VMEM budget allows,
    # so the ~0.35us/step grid overhead amortises and the matmul M dim (tb*S) is
    # MXU-sized; but keep >= 2 grid steps when B allows so the "parallel" axis can
    # shard across v7x's two TensorCores.
    Bp8 = _round_up(B, 8)
    per_row = (2 * S * H * 2            # keys tile, bf16, double-buffered
               + 2 * H * 4              # queries tile, f32, double-buffered
               + 2 * 4                  # packed mask word
               + 2 * H * 4              # output tile, f32, double-buffered
               + S * (4 * H * 2         # din concat (bf16)
                      + 3 * D * 4       # f32 activations / DICE temporaries
                      + 2 * 128 * 4))   # lane-padded score / softmax rows
    vmem_budget = 40 * 1024 * 1024      # conservative wrt v7x's 64 MiB physical VMEM
    tb_cap = max(8, (vmem_budget // per_row) // 8 * 8)
    tb = min(_round_up(min(block_b, Bp8), 8), Bp8, tb_cap)
    if tb >= Bp8 and Bp8 >= 16:
        tb = _round_up(Bp8 // 2, 8)     # >= 2 steps for v7x megacore sharding
    grid_b = pl.cdiv(Bp8, tb)
    Bp = grid_b * tb

    # Pad batch so every block is full and tb stays a multiple of 8 (padded rows
    # have an all-zero mask; their outputs are sliced off below).
    if Bp != B:
        pad = Bp - B
        queries_p = jnp.pad(queries, ((0, pad), (0, 0)))
        keys_p = jnp.pad(keys_b, ((0, pad), (0, 0), (0, 0)))
        mask_p = jnp.pad(mask_bits, ((0, pad), (0, 0)))
    else:
        queries_p, keys_p, mask_p = queries, keys_b, mask_bits

    weight_bytes = 4 * H * D * 2 + D * D * 2 + 8 * D * 4
    vmem_limit = int(min(max(2 * (tb * per_row + weight_bytes), 32 * 1024 * 1024),
                         48 * 1024 * 1024))
    cost = pl.CostEstimate(
        flops=2 * Bp * S * (4 * H * D + D * D + D) + 6 * Bp * S * D,
        transcendentals=2 * Bp * S * D + Bp * S,
        bytes_accessed=(Bp * S * H * 2 + Bp * H * 4 + Bp * 4 + Bp * H * 4
                        + weight_bytes))

    const2 = lambda i: (0, 0)
    out = pl.pallas_call(
        din_attention_kernel,
        out_shape=jax.ShapeDtypeStruct((Bp, H), jnp.float32),
        grid=(grid_b,),
        in_specs=[
            pl.BlockSpec((tb, H), lambda i: (i, 0)),        # queries (batch tiled)
            pl.BlockSpec((tb, S, H), lambda i: (i, 0, 0)),  # keys, bf16 (batch tiled)
            pl.BlockSpec((tb, 1), lambda i: (i, 0)),        # packed mask bits
            pl.BlockSpec((4 * H, D), const2),               # W1  (VMEM resident)
            pl.BlockSpec((D, D), const2),                   # W2  (VMEM resident)
            pl.BlockSpec((8, D), const2),                   # packed per-feature vectors
        ],
        # NOTE: a (tb, H=32) output block lowers to masked stores; re-presenting the
        # output lane-dense ((tb*H/128, 128)) is a further (mainly v5e) win, gated
        # on a bundle dump showing vst.msk pressure.
        out_specs=pl.BlockSpec((tb, H), lambda i: (i, 0)),
        compiler_params=pltpu.CompilerParams(
            dimension_semantics=("parallel",),
            vmem_limit_bytes=vmem_limit),
        cost_estimate=cost,
    )(queries_p, keys_p, mask_p, w1b, w2b, vecs)
    return out[:B] if Bp != B else out


def _reference(queries, keys, mask, params):
    # Pure-JAX f32 reference of the same forward.
    w1, b1, w2, b2, wo, bo, alphas, bn_gamma, bn_beta, bn_mean, bn_var = params
    B, S, H = keys.shape
    qe = jnp.broadcast_to(queries[:, None, :], (B, S, H))
    din = jnp.concatenate([qe, keys, qe - keys, qe * keys], axis=-1)

    def dice(x):
        xn = (x - bn_mean) / jnp.sqrt(bn_var + EPS) * bn_gamma + bn_beta
        xp = jax.nn.sigmoid(xn)
        return alphas * (1.0 - xp) * x + xp * x

    y = dice(din @ w1 + b1)
    y = dice(y @ w2 + b2)
    scores = (y @ wo)[..., 0] + bo
    scores = jnp.where(mask > 0.5, scores, -1e12) / math.sqrt(H)
    p = jax.nn.softmax(scores, axis=-1)
    return jnp.einsum('bs,bsh->bh', p, keys)


if __name__ == "__main__":
    B, S, H = 16, 8, 32
    layer_dims = [H, H]   # attention_layers_output_num; DICE(hidden_size) is shared

    root = jax.random.PRNGKey(0)
    (kq, kk, km, kw1, kb1, kw2, kb2, kwo, kbo,
     ka, kg, kbt, kmn, kvr) = jax.random.split(root, 14)

    queries = jax.random.normal(kq, (B, H), jnp.float32)
    keys = jax.random.normal(kk, (B, S, H), jnp.float32)
    lens = jax.random.randint(km, (B,), 1, S + 1)      # >=1 valid position per row
    mask = (jnp.arange(S)[None, :] < lens[:, None]).astype(jnp.float32)

    def linear_init(kw, kb, fan_in, fan_out):
        bound = 1.0 / math.sqrt(fan_in)
        w = jax.random.uniform(kw, (fan_in, fan_out), jnp.float32, -bound, bound)
        b = jax.random.uniform(kb, (fan_out,), jnp.float32, -bound, bound)
        return w, b

    w1, b1 = linear_init(kw1, kb1, 4 * H, layer_dims[0])
    w2, b2 = linear_init(kw2, kb2, layer_dims[0], layer_dims[1])
    wo, bo = linear_init(kwo, kbo, layer_dims[1], 1)

    # DICE parameters. PyTorch inits alphas to 0 and BN to identity; random
    # values here exercise the full (trained-checkpoint) path.
    alphas = 0.25 * jax.random.normal(ka, (H,), jnp.float32)
    bn_gamma = 1.0 + 0.1 * jax.random.normal(kg, (H,), jnp.float32)
    bn_beta = 0.1 * jax.random.normal(kbt, (H,), jnp.float32)
    bn_mean = 0.1 * jax.random.normal(kmn, (H,), jnp.float32)
    bn_var = 1.0 + 0.1 * jax.random.uniform(kvr, (H,), jnp.float32)

    params = (w1, b1, w2, b2, wo, bo, alphas, bn_gamma, bn_beta, bn_mean, bn_var)

    out = jax.block_until_ready(din_attention(queries, keys, mask, params))
    ref = _reference(queries, keys, mask, params)

    assert out.shape == (B, H)
    # bf16 MXU operands / bf16-streamed keys in the kernel -> compare to the f32
    # reference at bf16 tolerance.
    assert jnp.allclose(out, ref, atol=5e-2, rtol=5e-2), \
        f"max abs err {float(jnp.max(jnp.abs(out - ref)))}"

    print("KERNEL_OK")
</pallas_src>

<mosaic_0001>
module attributes {stable_mosaic.version = 11 : i64} {
  func.func @din_attention_kernel(%arg0: i32, %arg1: memref<8x32xf32, #tpu.memory_space<vmem>>, %arg2: memref<8x8x32xbf16, #tpu.memory_space<vmem>>, %arg3: memref<8x1xi32, #tpu.memory_space<vmem>>, %arg4: memref<128x32xbf16, #tpu.memory_space<vmem>>, %arg5: memref<32x32xbf16, #tpu.memory_space<vmem>>, %arg6: memref<8x32xf32, #tpu.memory_space<vmem>>, %arg7: memref<8x32xf32, #tpu.memory_space<vmem>>) attributes {dimension_semantics = [#tpu.dimension_semantics<parallel>], iteration_bounds = array<i64: 2>, scalar_prefetch = 0 : i64, scratch_operands = 0 : i64, tpu.core_type = #tpu.core_type<tc>, window_params = [{transform_indices = @transform_0, window_bounds = array<i64: 8, 32>}, {transform_indices = @transform_1, window_bounds = array<i64: 8, 8, 32>}, {transform_indices = @transform_2, window_bounds = array<i64: 8, 1>}, {pipeline_mode = #tpu.pipeline_mode<synchronous>, transform_indices = @transform_3, window_bounds = array<i64: 128, 32>}, {pipeline_mode = #tpu.pipeline_mode<synchronous>, transform_indices = @transform_4, window_bounds = array<i64: 32, 32>}, {pipeline_mode = #tpu.pipeline_mode<synchronous>, transform_indices = @transform_5, window_bounds = array<i64: 8, 32>}, {transform_indices = @transform_6, window_bounds = array<i64: 8, 32>}]} {
    %c0 = arith.constant 0 : index
    %c0_0 = arith.constant 0 : index
    %0 = vector.load %arg1[%c0, %c0_0] : memref<8x32xf32, #tpu.memory_space<vmem>>, vector<8x32xf32>
    %c0_1 = arith.constant 0 : index
    %c0_2 = arith.constant 0 : index
    %c0_3 = arith.constant 0 : index
    %1 = vector.load %arg2[%c0_1, %c0_2, %c0_3] : memref<8x8x32xbf16, #tpu.memory_space<vmem>>, vector<8x8x32xbf16>
    %c0_4 = arith.constant 0 : index
    %c0_5 = arith.constant 0 : index
    %2 = vector.load %arg6[%c0_4, %c0_5] : memref<8x32xf32, #tpu.memory_space<vmem>>, vector<8x32xf32>
    %3 = vector.extract_strided_slice %2 {offsets = [0, 0], sizes = [1, 32], strides = [1, 1]} : vector<8x32xf32> to vector<1x32xf32>
    %4 = vector.extract_strided_slice %2 {offsets = [1, 0], sizes = [1, 32], strides = [1, 1]} : vector<8x32xf32> to vector<1x32xf32>
    %5 = vector.extract_strided_slice %2 {offsets = [2, 0], sizes = [1, 32], strides = [1, 1]} : vector<8x32xf32> to vector<1x32xf32>
    %6 = vector.extract_strided_slice %2 {offsets = [3, 0], sizes = [1, 32], strides = [1, 1]} : vector<8x32xf32> to vector<1x32xf32>
    %7 = vector.extract_strided_slice %2 {offsets = [4, 0], sizes = [1, 32], strides = [1, 1]} : vector<8x32xf32> to vector<1x32xf32>
    %8 = vector.extract_strided_slice %2 {offsets = [5, 0], sizes = [1, 32], strides = [1, 1]} : vector<8x32xf32> to vector<1x32xf32>
    %9 = vector.extract_strided_slice %2 {offsets = [6, 0], sizes = [1, 32], strides = [1, 1]} : vector<8x32xf32> to vector<1x32xf32>
    %10 = arith.truncf %0 : vector<8x32xf32> to vector<8x32xbf16>
    %11 = vector.shape_cast %10 : vector<8x32xbf16> to vector<8x1x32xbf16>
    %12 = vector.shape_cast %11 : vector<8x1x32xbf16> to vector<8x1x32xbf16>
    %13 = vector.broadcast %12 : vector<8x1x32xbf16> to vector<8x8x32xbf16>
    %14 = arith.subf %13, %1 : vector<8x8x32xbf16>
    %15 = arith.mulf %13, %1 : vector<8x8x32xbf16>
    %16 = tpu.concatenate %13, %1, %14, %15 in 2 : vector<8x8x32xbf16>, vector<8x8x32xbf16>, vector<8x8x32xbf16>, vector<8x8x32xbf16> -> vector<8x8x128xbf16>
    %17 = vector.shape_cast %16 : vector<8x8x128xbf16> to vector<64x128xbf16>
    %c0_6 = arith.constant 0 : index
    %c0_7 = arith.constant 0 : index
    %18 = vector.load %arg4[%c0_6, %c0_7] : memref<128x32xbf16, #tpu.memory_space<vmem>>, vector<128x32xbf16>
    %cst = arith.constant dense<0.000000e+00> : vector<64x32xf32>
    %19 = tpu.matmul %17, %18, %cst {dimension_numbers = #tpu.dot_dimension_numbers<[1], [0], [0], [1], [0, 0, 1, 1], [], []>} : vector<64x128xbf16>, vector<128x32xbf16>, vector<64x32xf32> -> vector<64x32xf32>
    %20 = vector.broadcast %3 : vector<1x32xf32> to vector<64x32xf32>
    %21 = arith.addf %19, %20 : vector<64x32xf32>
    %22 = vector.broadcast %7 : vector<1x32xf32> to vector<64x32xf32>
    %23 = arith.mulf %21, %22 : vector<64x32xf32>
    %24 = vector.broadcast %8 : vector<1x32xf32> to vector<64x32xf32>
    %25 = arith.addf %23, %24 : vector<64x32xf32>
    %26 = arith.negf %25 : vector<64x32xf32>
    %27 = math.exp %26 : vector<64x32xf32>
    %cst_8 = arith.constant 1.000000e+00 : f32
    %28 = vector.broadcast %cst_8 : f32 to vector<64x32xf32>
    %29 = arith.addf %28, %27 : vector<64x32xf32>
    %30 = arith.divf %28, %29 : vector<64x32xf32>
    %31 = vector.broadcast %6 : vector<1x32xf32> to vector<64x32xf32>
    %32 = arith.mulf %31, %30 : vector<64x32xf32>
    %33 = vector.broadcast %5 : vector<1x32xf32> to vector<64x32xf32>
    %34 = arith.addf %33, %32 : vector<64x32xf32>
    %35 = arith.mulf %21, %34 : vector<64x32xf32>
    %36 = arith.truncf %35 : vector<64x32xf32> to vector<64x32xbf16>
    %c0_9 = arith.constant 0 : index
    %c0_10 = arith.constant 0 : index
    %37 = vector.load %arg5[%c0_9, %c0_10] : memref<32x32xbf16, #tpu.memory_space<vmem>>, vector<32x32xbf16>
    %cst_11 = arith.constant dense<0.000000e+00> : vector<64x32xf32>
    %38 = tpu.matmul %36, %37, %cst_11 {dimension_numbers = #tpu.dot_dimension_numbers<[1], [0], [0], [1], [0, 0, 1, 1], [], []>} : vector<64x32xbf16>, vector<32x32xbf16>, vector<64x32xf32> -> vector<64x32xf32>
    %39 = vector.broadcast %4 : vector<1x32xf32> to vector<64x32xf32>
    %40 = arith.addf %38, %39 : vector<64x32xf32>
    %41 = vector.broadcast %7 : vector<1x32xf32> to vector<64x32xf32>
    %42 = arith.mulf %40, %41 : vector<64x32xf32>
    %43 = vector.broadcast %8 : vector<1x32xf32> to vector<64x32xf32>
    %44 = arith.addf %42, %43 : vector<64x32xf32>
    %45 = arith.negf %44 : vector<64x32xf32>
    %46 = math.exp %45 : vector<64x32xf32>
    %cst_12 = arith.constant 1.000000e+00 : f32
    %47 = vector.broadcast %cst_12 : f32 to vector<64x32xf32>
    %48 = arith.addf %47, %46 : vector<64x32xf32>
    %49 = arith.divf %47, %48 : vector<64x32xf32>
    %50 = vector.broadcast %6 : vector<1x32xf32> to vector<64x32xf32>
    %51 = arith.mulf %50, %49 : vector<64x32xf32>
    %52 = vector.broadcast %5 : vector<1x32xf32> to vector<64x32xf32>
    %53 = arith.addf %52, %51 : vector<64x32xf32>
    %54 = arith.mulf %40, %53 : vector<64x32xf32>
    %55 = vector.broadcast %9 : vector<1x32xf32> to vector<64x32xf32>
    %56 = arith.mulf %54, %55 : vector<64x32xf32>
    %cst_13 = arith.constant dense<0.000000e+00> : vector<64xf32>
    %57 = vector.multi_reduction <add>, %56, %cst_13 [1] : vector<64x32xf32> to vector<64xf32>
    %58 = vector.shape_cast %57 : vector<64xf32> to vector<64x1xf32>
    %59 = vector.shape_cast %58 : vector<64x1xf32> to vector<8x8xf32>
    %c0_14 = arith.constant 0 : index
    %c0_15 = arith.constant 0 : index
    %60 = vector.load %arg3[%c0_14, %c0_15] : memref<8x1xi32, #tpu.memory_space<vmem>>, vector<8x1xi32>
    %61 = tpu.iota {dimensions = array<i32: 1>} : vector<8x8xi32>
    %62 = vector.broadcast %60 : vector<8x1xi32> to vector<8x8xi32>
    %63 = arith.shrsi %62, %61 : vector<8x8xi32>
    %c1_i32 = arith.constant 1 : i32
    %64 = vector.broadcast %c1_i32 : i32 to vector<8x8xi32>
    %65 = arith.andi %63, %64 : vector<8x8xi32>
    %c0_i32 = arith.constant 0 : i32
    %66 = vector.broadcast %c0_i32 : i32 to vector<8x8xi32>
    %67 = arith.cmpi sgt, %65, %66 : vector<8x8xi32>
    %cst_16 = arith.constant -9.99999995E+11 : f32
    %68 = vector.broadcast %cst_16 : f32 to vector<8x8xf32>
    %69 = arith.select %67, %59, %68 : vector<8x8xi1>, vector<8x8xf32>
    %cst_17 = arith.constant 0.176776692 : f32
    %70 = vector.broadcast %cst_17 : f32 to vector<8x8xf32>
    %71 = arith.mulf %69, %70 : vector<8x8xf32>
    %cst_18 = arith.constant dense<0xFF800000> : vector<8xf32>
    %72 = vector.multi_reduction <maximumf>, %71, %cst_18 [1] : vector<8x8xf32> to vector<8xf32>
    %73 = vector.shape_cast %72 : vector<8xf32> to vector<8x1xf32>
    %74 = vector.broadcast %73 : vector<8x1xf32> to vector<8x8xf32>
    %75 = arith.subf %71, %74 : vector<8x8xf32>
    %76 = math.exp %75 : vector<8x8xf32>
    %cst_19 = arith.constant dense<0.000000e+00> : vector<8xf32>
    %77 = vector.multi_reduction <add>, %76, %cst_19 [1] : vector<8x8xf32> to vector<8xf32>
    %78 = vector.shape_cast %77 : vector<8xf32> to vector<8x1xf32>
    %79 = tpu.reciprocal %78 {approx = true} : vector<8x1xf32> -> vector<8x1xf32>
    %80 = vector.broadcast %79 : vector<8x1xf32> to vector<8x8xf32>
    %81 = arith.mulf %76, %80 : vector<8x8xf32>
    %82 = vector.shape_cast %81 : vector<8x8xf32> to vector<8x8x1xf32>
    %83 = arith.extf %1 : vector<8x8x32xbf16> to vector<8x8x32xf32>
    %84 = vector.broadcast %82 : vector<8x8x1xf32> to vector<8x8x32xf32>
    %85 = arith.mulf %84, %83 : vector<8x8x32xf32>
    %cst_20 = arith.constant dense<0.000000e+00> : vector<8x32xf32>
    %86 = vector.multi_reduction <add>, %85, %cst_20 [1] : vector<8x8x32xf32> to vector<8x32xf32>
    %c0_21 = arith.constant 0 : index
    %c0_22 = arith.constant 0 : index
    %87 = vector.load %arg7[%c0_21, %c0_22] : memref<8x32xf32, #tpu.memory_space<vmem>>, vector<8x32xf32>
    tpu.vector_store %arg7[%c0_21, %c0_22], %86 {strides = array<i32>} : memref<8x32xf32, #tpu.memory_space<vmem>>, vector<8x32xf32>,
    return
  }
  func.func @transform_0(%arg0: i32) -> (i32, i32) {
    %c0_i32 = arith.constant 0 : i32
    %c0_i32_0 = arith.constant 0 : i32
    return %arg0, %c0_i32 : i32, i32
  }
  func.func @transform_1(%arg0: i32) -> (i32, i32, i32) {
    %c0_i32 = arith.constant 0 : i32
    %c0_i32_0 = arith.constant 0 : i32
    %c0_i32_1 = arith.constant 0 : i32
    return %arg0, %c0_i32, %c0_i32_0 : i32, i32, i32
  }
  func.func @transform_2(%arg0: i32) -> (i32, i32) {
    %c0_i32 = arith.constant 0 : i32
    %c0_i32_0 = arith.constant 0 : i32
    return %arg0, %c0_i32 : i32, i32
  }
  func.func @transform_3(%arg0: i32) -> (i32, i32) {
    %c0_i32 = arith.constant 0 : i32
    %c0_i32_0 = arith.constant 0 : i32
    %c0_i32_1 = arith.constant 0 : i32
    return %c0_i32, %c0_i32_0 : i32, i32
  }
  func.func @transform_4(%arg0: i32) -> (i32, i32) {
    %c0_i32 = arith.constant 0 : i32
    %c0_i32_0 = arith.constant 0 : i32
    %c0_i32_1 = arith.constant 0 : i32
    return %c0_i32, %c0_i32_0 : i32, i32
  }
  func.func @transform_5(%arg0: i32) -> (i32, i32) {
    %c0_i32 = arith.constant 0 : i32
    %c0_i32_0 = arith.constant 0 : i32
    %c0_i32_1 = arith.constant 0 : i32
    return %c0_i32, %c0_i32_0 : i32, i32
  }
  func.func @transform_6(%arg0: i32) -> (i32, i32) {
    %c0_i32 = arith.constant 0 : i32
    %c0_i32_0 = arith.constant 0 : i32
    return %arg0, %c0_i32 : i32, i32
  }
}

</mosaic_0001>

<bundles_post_ra>
// kernel: tpu_custom_call.1
= control target key start
LH: loop header
LB: loop body
LE: loop exit
PB: predicated region body
PF: predicated region fallthrough
CT: control target
= control target key end

     0   :  { %11 = vsyncpa [#allocation3], 0  ;;  %s2398_s0 = inlined_call_operand.vmem [shape: f32[16,32], index: 0, kind: input, shape index: {}]   ;;  %s2399_s1 = inlined_call_operand.vmem [shape: bf16[16,8,32], index: 1, kind: input, shape index: {}]   ;;  %s2400_s2 = inlined_call_operand.vmem [shape: s32[16,1], index: 2, kind: input, shape index: {}]   ;;  %s2401_s3 = inlined_call_operand.vmem [shape: bf16[128,32], index: 3, kind: input, shape index: {}]   ;;  %s2402_s4 = inlined_call_operand.vmem [shape: bf16[32,32], index: 4, kind: input, shape index: {}]   ;;  %s2403_s5 = inlined_call_operand.hbm [shape: f32[8,32], index: 5, kind: input, shape index: {}]   ;;  %s2404_s6 = inlined_call_operand.hbm [shape: f32[16,32], index: 6, kind: output, shape index: {}]  }
   0x1   :  { %12 = vsyncpa [#allocation4], 0 }
   0x2   :  { %14 = vsyncpa [#allocation4 + $0x1], 0  ;;  %s1823_s21 = smov 0   ;;  %s1825_s22 = smov 0  }
   0x3   :  { %s1827_s23 = smov 0   ;;  %s1829_s24 = smov 0  }
   0x4 LB: > { %s1844_s25 = sadd.s32 4294967295, %s1779_s24   ;;  %s1421_s26 = sadd.s32 4294967294, %s1779_s24   ;;  %s1779_s24 = sphi %s1829_s24, %s2420_s24   ;;  %s1775_s23 = sphi %s1827_s23, %s2419_s23   ;;  %s1771_s22 = sphi %s1825_s22, %s2418_s22   ;;  %s1767_s21 = sphi %s1823_s21, %s2417_s21  }
   0x5   : > { %s1848_s27 = sadd.s32 1, %s1779_s24   ;;  %s168_s28 = sadd.s32 1, %s1775_s23 }
   0x6   : > { %s165_s29 = ssub.s32 %s1779_s24, %s1848_s27  ;;  %p178_p0 = scmp.ne.s32.totalorder %s1775_s23, %s1771_s22 }
   0x7   : > { %p166_p1 = scmp.eq.s32.totalorder %s165_s29, 0  ;;  %p179_p2 = scmp.eq.s32.totalorder %s1844_s25, 1 }
   0x8   : > { %p184_p3 = scmp.ne.s32.totalorder %s1771_s22, %s1767_s21  ;;  %p185_p4 = scmp.eq.s32.totalorder %s1421_s26, 1 }
   0x9   : > { %s1859_s30 = scalar_select %p166_p1, %s1775_s23, %s168_s28  }
   0xa   : > { %p1861_p5 = por %p179_p2, %p178_p0  ;;  %p1865_p6 = por %p185_p4, %p184_p3 }
   0xb   : > { %p1422_p7 = scmp.ge.s32.totalorder %s1779_s24, 1  ;;  %p192_p8 = scmp.lt.s32.totalorder %s1779_s24, 3 }
   0xc   : > { %s2408_s7 = scalar_select %p1861_p5, 1, 0 }
   0xd   : > { %s2409_s8 = scalar_select %p1865_p6, 1, 0 }
   0xe   : > { %p2405_p9 = scmp.eq.s32.totalorder %s1844_s25, 0  ;;  %p1872_p10 = pnand %p1422_p7, %p192_p8 }
   0xf   : > { %s1781_s10 = smov [#allocation2]   ;;  %s1685_s15 = scalar_lea.hbm %s2403_s5, 128 }
  0x10   : > { %s2410_s9 = scalar_select %p1872_p10, 1, 0 }
  0x11   : > { %s211_s11 = sshll.u32 %s1781_s10, 4  ;;  %p1542_p11 = pneg %p1872_p10  ;;  %s212_s11 = int_to_ptr.vmem [resolvable:$true] %s211_s11 }
  0x12   : > { %p1686_p13 = scmp.ne.s32.totalorder %s2403_s5, %s1685_s15  ;;  %p1692_p3 = scmp.lt.u32.totalorder %s1685_s15, %s2403_s5 }
  0x13   : > { %p1880_p12 = pnand %p2405_p9, %p1542_p11 }
  0x15   : > { %p1687_p0 = pneg %p1880_p12 }
  0x17   : > { %p1688_p1 = pnand %p1687_p0, %p1686_p13 }
  0x19   : > { %p1689_p2 = pneg %p1688_p1 }
  0x1b   : > { %p1694_p4 = pnand %p1692_p3, %p1689_p2 }
  0x1d   : > { %1697 = shalt.err (!%p1694_p4)
}
  0x1e   : > { %s1698_s20 = scalar_lea.vmem %s212_s11, 128  ;;  %p1706_p9 = scmp.lt.s32.totalorder %s212_s11, %s212_s11 }
  0x1f   : > { %p1699_p7 = scmp.ne.s32.totalorder %s212_s11, %s1698_s20  ;;  %p1707_p6 = scmp.lt.s32.totalorder %s1698_s20, %s1698_s20 }
  0x21   : > { %p1701_p8 = pnand %p1699_p7, %p1687_p0  ;;  %p1708_p5 = por %p1707_p6, %p1706_p9 }
  0x23   : > { %p1702_p11 = pneg %p1701_p8 }
  0x25   : > { %p1709_p10 = pnand %p1708_p5, %p1702_p11 }
  0x27   : > { %1712 = shalt.err (!%p1709_p10)
}
  0x28   : > { %1545 = dma.hbm_to_vmem [thread:$0]  (!%p1880_p12), %s2403_s5, 128, %s212_s11, [#allocation3]  }
  0x29   : > { %p2412_p13 = scmp.ne.s32.totalorder %s2410_s9, 0 }
  0x2a   : > { %p2413_p1 = scmp.eq.s32.totalorder (!%p2412_p13), %s1844_s25, 0 }
  0x2b   : > { %247 = sbr.rel (%p2412_p13) target bundleno = 1374 (0x55e), region = 44 }
  0x32   : > { %1758 = dma.done.wait (%p2413_p1), [#allocation3], 128   ;;  %p2414_p0 = pmov %p2413_p1 }
  0x33   : > { %s1429_s29 = sshll.u32 %s1844_s25, 3  ;;  %v315_v0 = vlaneseq  ;;  %p285_p6 = scmp.lt.s32.totalorder %s1844_s25, 1  ;;  %v1782_v1 = vmov 1966171168   ;;  %v1601_v18 = vld [vmem:[%s2401_s3] sm:$0xff]   ;;  %v1602_v20 = vld [vmem:[%s2401_s3 + $0x8] sm:$0xff]  }
  0x34   : > { %1760 = vsyncadd (%p2414_p0), [#allocation3], 4294967168  ;;  %p290_p5 = scmp.lt.s32.totalorder %s1429_s29, 15  ;;  %v313_v2 = vunpack.c.l.s4 %v1782_v1  ;;  %s1783_s18 = smov 32   ;;  %1500 = vmatprep.subr.bf16.mxu0 %v1601_v18  ;;  %v1603_v29 = vld [vmem:[%s2401_s3 + $0x10] sm:$0xff]   ;;  %v1604_v39 = vld [vmem:[%s2401_s3 + $0x18] sm:$0xff]  }
  0x35   : > { %s1909_s10 = scalar_select %p285_p6, %s1844_s25, 1  ;;  %v1912_v4 = vshrl.u32 %v315_v0, 7  ;;  %1501 = vmatpush3.bf16.msra.mxu0 %v1601_v18  ;;  %v1605_v48 = vld [vmem:[%s2401_s3 + $0x20] sm:$0xff]   ;;  %v1606_v58 = vld [vmem:[%s2401_s3 + $0x28] sm:$0xff]   ;;  %vm544_vm0 = vcmask 261120   ;;  %vm569_vm1 = vcmask 523264  }
  0x36   : > { %s2422_s29 = smov (!%p290_p5, %s1429_s29), 15  ;;  %v314_v3 = vunpack.c.0.s8 %v313_v2  ;;  %1502 = vmatprep.subr.bf16.mxu0 %v1602_v20  ;;  %s1785_s26 = smov 96   ;;  %vm586_vm2 = vcmask 785408   ;;  %vm1138_vm3 = vcmask 1041409   ;;  %vm1140_vm4 = vcmask 1042434  }
  0x37   : > { %s1430_s9 = sshll.u32 %s2422_s29, 2  ;;  %s1428_s14 = sshll.u32 %s1909_s10, 3  ;;  %v1967_v24 = vsub.s32 0, %v1912_v4  ;;  %vm1142_vm5 = vcmask 1043459   ;;  %vm1144_vm6 = vcmask 1044484   ;;  %vm1146_vm7 = vcmask 1045509  }
  0x38   : > { %s1917_s13 = scalar_lea.vmem %s2399_s1, %s1430_s9  ;;  %s288_s17 = scalar_lea.vmem %s2398_s0, %s1428_s14  ;;  %v317_v11 = vsub.s32 %v314_v3, %v1912_v4  ;;  %v1607_v3 = vld [vmem:[%s2401_s3 + $0x30] sm:$0xff]   ;;  %vm1148_vm8 = vcmask 1046534   ;;  %vm1150_vm9 = vcmask 1047559   ;;  %vm1155_vm11 = vcmask 64512  }
  0x39   : > { %v1921_v5 = vld [vmem:[%s1917_s13] sm:$0xf]  ;;  %v1924_v6 = vld [vmem:[%s1917_s13 + $0x8] sm:$0xf]  ;;  %v1927_v7 = vld [vmem:[%s1917_s13 + $0x4] sm:$0xf]  ;;  %1503 = vmatpush3.bf16.msra.mxu0 %v1602_v20  ;;  %s298_s20 = scalar_lea.vmem %s2400_s2, %s1428_s14 }
  0x3a   : > { %v1436_v8 = vcombine.low %v1921_v5, %v1921_v5  ;;  %v1438_v9 = vcombine.low %v1924_v6, %v1924_v6  ;;  %v1939_v10 = vld [vmem:[%s1917_s13 + $0xc] sm:$0xf]  ;;  %v1943_v12 = vld [vmem:[%s1917_s13 + $0x10] sm:$0xf]  ;;  %v1946_v13 = vld [vmem:[%s1917_s13 + $0x14] sm:$0xf]  ;;  %v1437_v15 = vcombine.low %v1927_v7, %v1927_v7  ;;  %1504 = vmatprep.subr.bf16.mxu0 %v1603_v29 }
  0x3b   : > { %v300_v14 = vld [vmem:[%s288_s17] sm:$0xff]  ;;  %v1439_v16 = vcombine.low %v1939_v10, %v1939_v10  ;;  %v1440_v21 = vcombine.low %v1943_v12, %v1943_v12  ;;  %v1441_v22 = vcombine.low %v1946_v13, %v1946_v13  ;;  %s1784_s17 = smov 64   ;;  %v2004_v54 = vld [vmem:[%s1917_s13 + $0x1c] sm:$0xf]  ;;  %s282_s10 = sand.u32 1, %s1771_s22  }
  0x3c   : > { %480 = vrot.lane.b32.xlu0 %v1436_v8, %s1783_s18  ;;  %484 = vrot.lane.b32.xlu1 %v1438_v9, %s1783_s18  ;;  %v310_v17 = vpack.c.bf16 %v300_v14, %v300_v14  ;;  %v1443_v62 = vcombine.low %v2004_v54, %v2004_v54  ;;  %v2028_v9 = vld [vmem:[%s1917_s13 + $0x18] sm:$0xf]  ;;  %s1479_s14 = sshll.u32 %s1844_s25, 7  ;;  %s1313_s25 = scalar_lea.sflag [#allocation4], %s282_s10 }
  0x3d   : > { %1505 = vmatpush3.bf16.msra.mxu0 %v1603_v29  ;;  %s2352_s11 = scalar_lea.hbm %s2404_s6, %s1479_s14  ;;  %p2415_p10 = scmp.ne.s32.totalorder %s2408_s7, 0 }
  0x3e   : > { %v318_v19 = vrot.slane %v310_v17, %v317_v11  ;;  %1506 = vmatprep.subr.bf16.mxu0 %v1604_v39  ;;  %s1787_s12 = smov [#allocation5]  }
  0x3f   : > { %s1717_s15 = sshll.u32 %s1787_s12, 4  ;;  %s1718_s15 = int_to_ptr.vmem [resolvable:$false] %s1717_s15 }
  0x40   : > { %482 = vrot.lane.b32.xlu0 %v1437_v15, %s1783_s18  ;;  %486 = vrot.lane.b32.xlu1 %v1439_v16, %s1783_s18  ;;  %v326_v23 = vrot.slane %v318_v19, %v317_v11  ;;  %v319_v25 = vcombine.high %v318_v19, %v318_v19  ;;  %v1608_v16 = vld [vmem:[%s2401_s3 + $0x38] sm:$0xff]   ;;  %s1719_s16 = scalar_lea.vmem %s1718_s15, 256 }
  0x41   : > { %1507 = vmatpush3.bf16.msra.mxu0 %v1604_v39 }
  0x42   : > { %v1432_v26 = vpack.i.b16 %v326_v23, %v326_v23  ;;  %v337_v27 = vunpack.i.h.s16 %v326_v23  ;;  %v333_v28 = vrot.slane %v319_v25, %v317_v11  ;;  %v334_v34 = vcombine.high %v326_v23, %v326_v23  ;;  %1508 = vmatprep.subr.bf16.mxu0 %v1605_v48 }
  0x44   : > { %488 = vrot.lane.b32.xlu0 %v1440_v21, %s1783_s18  ;;  %490 = vrot.lane.b32.xlu1 %v1441_v22, %s1783_s18  ;;  %v355_v30 = vrot.slane %v1432_v26, %v1967_v24  ;;  %v345_v31 = vpack.i.b16 %v337_v27, %v337_v27  ;;  %v1433_v32 = vpack.i.b16 %v333_v28, %v333_v28  ;;  %v339_v33 = vunpack.i.h.s16 %v333_v28 }
  0x45   : > { %v341_v43 = vunpack.i.h.s16 %v334_v34  ;;  %v335_v47 = vcombine.high %v333_v28, %v333_v28  ;;  %v1434_v52 = vpack.i.b16 %v334_v34, %v334_v34  ;;  %1509 = vmatpush3.bf16.msra.mxu0 %v1605_v48 }
  0x46   : > { %v385_v35 = vpack.i.b16 %v355_v30, %v355_v30  ;;  %v359_v36 = vrot.slane %v345_v31, %v1967_v24  ;;  %v363_v37 = vrot.slane %v1433_v32, %v1967_v24  ;;  %v347_v38 = vpack.i.b16 %v339_v33, %v339_v33  ;;  %1510 = vmatprep.subr.bf16.mxu0 %v1606_v58 }
  0x47   : > { %v349_v56 = vpack.i.b16 %v341_v43, %v341_v43  ;;  %v343_v57 = vunpack.i.h.s16 %v335_v47  ;;  %v371_v60 = vrot.slane %v1434_v52, %v1967_v24  ;;  %v1435_v61 = vpack.i.b16 %v335_v47, %v335_v47 }
  0x48   : > { %v1981_v40 = vrot.slane %v385_v35, %v1967_v24  ;;  %v392_v41 = vpack.i.b16 %v359_v36, %v359_v36  ;;  %v399_v42 = vpack.i.b16 %v363_v37, %v363_v37  ;;  %v367_v46 = vrot.slane %v347_v38, %v1967_v24 }
  0x49   : > { %v375_v1 = vrot.slane %v349_v56, %v1967_v24  ;;  %v351_v2 = vpack.i.b16 %v343_v57, %v343_v57  ;;  %v379_v8 = vrot.slane %v1435_v61, %v1967_v24  ;;  %1511 = vmatpush3.bf16.msra.mxu0 %v1606_v58 }
  0x4a   : > { %v440_v44 = vsub.bf16 %v1981_v40, %v1921_v5  ;;  %v1986_v45 = vrot.slane %v392_v41, %v1967_v24  ;;  %v448_v50 = vmul.bf16 %v1981_v40, %v1921_v5  ;;  %v1998_v51 = vrot.slane %v399_v42, %v1967_v24  ;;  %1512 = vmatprep.subr.bf16.mxu0 %v1607_v3 }
  0x4b   : > { %v406_v55 = vpack.i.b16 %v367_v46, %v367_v46  ;;  %v420_v14 = vpack.i.b16 %v375_v1, %v375_v1  ;;  %v383_v15 = vrot.slane %v351_v2, %v1967_v24  ;;  %v427_v18 = vpack.i.b16 %v379_v8, %v379_v8 }
  0x4c   : > { %504 = vrot.lane.b32.xlu0 %v440_v44, %s1784_s17  ;;  %v441_v49 = vsub.bf16 %v1986_v45, %v1927_v7  ;;  %v449_v53 = vmul.bf16 %v1986_v45, %v1927_v7  ;;  %v442_v59 = vsub.bf16 %v1998_v51, %v1924_v6  ;;  %v450_v5 = vmul.bf16 %v1998_v51, %v1924_v6 }
  0x4d   : > { %v2017_v63 = vrot.slane %v406_v55, %v1967_v24  ;;  %v413_v7 = vpack.i.b16 %v371_v60, %v371_v60  ;;  %v1442_v6 = vcombine.low %v2028_v9, %v2028_v9  ;;  %1513 = vmatpush3.bf16.msra.mxu0 %v1607_v3  ;;  %v2047_v20 = vrot.slane %v420_v14, %v1967_v24 }
  0x4e   : > { %506 = vrot.lane.b32.xlu1 %v441_v49, %s1784_s17  ;;  %v434_v21 = vpack.i.b16 %v383_v15, %v383_v15  ;;  %1514 = vmatprep.subr.bf16.mxu0 %v1608_v16  ;;  %v2053_v23 = vrot.slane %v427_v18, %v1967_v24 }
  0x4f   : > { %v443_v11 = vsub.bf16 %v2017_v63, %v1939_v10  ;;  %v2041_v17 = vrot.slane %v413_v7, %v1967_v24  ;;  %v451_v19 = vmul.bf16 %v2017_v63, %v1939_v10  ;;  %v445_v25 = vsub.bf16 %v2047_v20, %v1946_v13 }
  0x50   : > { %528 = vrot.lane.b32.xlu0 %v448_v50, %s1785_s26  ;;  %v2059_v10 = vrot.slane %v434_v21, %v1967_v24  ;;  %v446_v26 = vsub.bf16 %v2053_v23, %v2028_v9  ;;  %v453_v29 = vmul.bf16 %v2047_v20, %v1946_v13  ;;  %v454_v30 = vmul.bf16 %v2053_v23, %v2028_v9 }
  0x51   : > { %v444_v22 = vsub.bf16 %v2041_v17, %v1943_v12  ;;  %1515 = vmatpush3.bf16.msra.mxu0 %v1608_v16  ;;  %v452_v28 = vmul.bf16 %v2041_v17, %v1943_v12 }
  0x52   : > { %530 = vrot.lane.b32.xlu1 %v449_v53, %s1785_s26  ;;  %v447_v27 = vsub.bf16 %v2059_v10, %v2004_v54  ;;  %v455_v31 = vmul.bf16 %v2059_v10, %v2004_v54 }
  0x54   : > { %508 = vrot.lane.b32.xlu0 %v442_v59, %s1784_s17 }
  0x56   : > { %494 = vrot.lane.b32.xlu1 %v1443_v62, %s1783_s18 }
  0x58   : > { %532 = vrot.lane.b32.xlu0 %v450_v5, %s1785_s26 }
  0x5a   : > { %510 = vrot.lane.b32.xlu1 %v443_v11, %s1784_s17 }
  0x5c   : > { %492 = vrot.lane.b32.xlu0 %v1442_v6, %s1783_s18 }
  0x5e   : > { %534 = vrot.lane.b32.xlu1 %v451_v19, %s1785_s26 }
  0x60   : > { %512 = vrot.lane.b32.xlu0 %v444_v22, %s1784_s17 }
  0x62   : > { %514 = vrot.lane.b32.xlu1 %v445_v25, %s1784_s17 }
  0x64   : > { %516 = vrot.lane.b32.xlu0 %v446_v26, %s1784_s17 }
  0x66   : > { %518 = vrot.lane.b32.xlu1 %v447_v27, %s1784_s17  ;;  %v1609_v27 = vld [vmem:[%s2402_s4] sm:$0xff]  }
  0x67   : > { %1524 = vmatprep.subr.bf16.mxu1 %v1609_v27 }
  0x68   : > { %536 = vrot.lane.b32.xlu0 %v452_v28, %s1785_s26  ;;  %1525 = vmatpush3.bf16.msra.mxu1 %v1609_v27  ;;  %v762_v28 = vsub.s32 4, %v1912_v4 }
  0x6a   : > { %538 = vrot.lane.b32.xlu1 %v453_v29, %s1785_s26  ;;  %v774_v29 = vsub.s32 5, %v1912_v4 }
  0x6c   : > { %540 = vrot.lane.b32.xlu0 %v454_v30, %s1785_s26 }
  0x6e   : > { %542 = vrot.lane.b32.xlu1 %v455_v31, %s1785_s26 }
  0xae   : > { %v481_v12 = vpop.permute.xlu0 %480  ;;  %v485_v32 = vpop.permute.xlu1 %484 }
  0xaf   : > { %v547_v39 = vsel %vm544_vm0, %v1981_v40, %v481_v12  ;;  %v553_v40 = vsel %vm544_vm0, %v1998_v51, %v485_v32 }
  0xb2   : > { %v483_v33 = vpop.permute.xlu0 %482  ;;  %v487_v34 = vpop.permute.xlu1 %486 }
  0xb3   : > { %v550_v41 = vsel %vm544_vm0, %v1986_v45, %v483_v33  ;;  %v556_v45 = vsel %vm544_vm0, %v2017_v63, %v487_v34 }
  0xb6   : > { %v489_v35 = vpop.permute.xlu0 %488  ;;  %v491_v13 = vpop.permute.xlu1 %490 }
  0xb7   : > { %v559_v51 = vsel %vm544_vm0, %v2041_v17, %v489_v35  ;;  %v562_v63 = vsel %vm544_vm0, %v2047_v20, %v491_v13 }
  0xbe   : > { %v505_v36 = vpop.permute.xlu0 %504 }
  0xbf   : > { %v571_v42 = vsel %vm569_vm1, %v547_v39, %v505_v36 }
  0xc0   : > { %v507_v37 = vpop.permute.xlu1 %506 }
  0xc1   : > { %v573_v43 = vsel %vm569_vm1, %v550_v41, %v507_v37 }
  0xc2   : > { %v529_v38 = vpop.permute.xlu0 %528 }
  0xc3   : > { %v588_v46 = vsel %vm586_vm2, %v571_v42, %v529_v38 }
  0xc4   : > { %v531_v44 = vpop.permute.xlu1 %530 }
  0xc5   : > { %v590_v47 = vsel %vm586_vm2, %v573_v43, %v531_v44 }
  0xc6   : > { %v509_v48 = vpop.permute.xlu0 %508  ;;  %v1444_v49 = vcombine.low %v588_v46, %v590_v47 }
  0xc7   : > { %v575_v56 = vsel %vm569_vm1, %v553_v40, %v509_v48 }
  0xc8   : > { %1516 = vmatprep.mubr.bf16.mxu0 %v1444_v49  ;;  %v495_v50 = vpop.permute.xlu1 %494 }
  0xc9   : > { %v568_v18 = vsel %vm544_vm0, %v2059_v10, %v495_v50  ;;  %v2119_v10 = vld [vmem:[#allocation2] sm:$0xff] }
  0xca   : > { %v533_v52 = vpop.permute.xlu0 %532  ;;  %v622_v30 = vrot.slane %v2119_v10, %v1967_v24  ;;  %v2128_v31 = vrot.slane %v2119_v10, %v762_v28  ;;  %v2135_v33 = vrot.slane %v2119_v10, %v774_v29 }
  0xcb   : > { %v592_v59 = vsel %vm586_vm2, %v575_v56, %v533_v52 }
  0xcc   : > { %v511_v53 = vpop.permute.xlu1 %510 }
  0xcd   : > { %v577_v57 = vsel %vm569_vm1, %v556_v45, %v511_v53 }
  0xce   : > { %v493_v55 = vpop.permute.xlu0 %492 }
  0xcf   : > { %v565_v17 = vsel %vm544_vm0, %v2053_v23, %v493_v55  ;;  %v1610_v23 = vld [vmem:[%s2402_s4 + $0x8] sm:$0xff]  }
  0xd0   : > { %v535_v58 = vpop.permute.xlu1 %534  ;;  %1526 = vmatprep.subr.bf16.mxu1 %v1610_v23 }
  0xd1   : > { %v594_v60 = vsel %vm586_vm2, %v577_v57, %v535_v58  ;;  %1527 = vmatpush3.bf16.msra.mxu1 %v1610_v23 }
  0xd2   : > { %v1445_v61 = vcombine.low %v592_v59, %v594_v60  ;;  %v513_v62 = vpop.permute.xlu0 %512 }
  0xd3   : > { %v579_v7 = vsel %vm569_vm1, %v559_v51, %v513_v62 }
  0xd4   : > { %1517 = vmatmul.mubr.bf16.vlgmr.msra.gmra.mrb[0].mxu0 %v1445_v61  ;;  %v515_v1 = vpop.permute.xlu1 %514 }
  0xd5   : > { %v581_v8 = vsel %vm569_vm1, %v562_v63, %v515_v1 }
  0xd6   : > { %v517_v2 = vpop.permute.xlu0 %516 }
  0xd7   : > { %v583_v19 = vsel %vm569_vm1, %v565_v17, %v517_v2 }
  0xd8   : > { %v519_v3 = vpop.permute.xlu1 %518 }
  0xd9   : > { %v585_v20 = vsel %vm569_vm1, %v568_v18, %v519_v3 }
  0xda   : > { %v537_v5 = vpop.permute.xlu0 %536 }
  0xdb   : > { %v596_v14 = vsel %vm586_vm2, %v579_v7, %v537_v5 }
  0xdc   : > { %v539_v11 = vpop.permute.xlu1 %538 }
  0xdd   : > { %v598_v15 = vsel %vm586_vm2, %v581_v8, %v539_v11 }
  0xde   : > { %v1446_v16 = vcombine.low %v596_v14, %v598_v15  ;;  %v541_v6 = vpop.permute.xlu0 %540 }
  0xdf   : > { %v600_v22 = vsel %vm586_vm2, %v583_v19, %v541_v6 }
  0xe0   : > { %1520 = vmatprep.mubr.bf16.mxu0 %v1446_v16  ;;  %v543_v21 = vpop.permute.xlu1 %542 }
  0xe1   : > { %v602_v25 = vsel %vm586_vm2, %v585_v20, %v543_v21  ;;  %v834_v20 = vsub.s32 3, %v1912_v4 }
  0xe2   : > { %v1447_v26 = vcombine.low %v600_v22, %v602_v25  ;;  %v846_v25 = vsub.s32 2, %v1912_v4 }
  0xe4   : > { %1521 = vmatmul.mubr.bf16.gmra.mrb[4].mxu0 %v1447_v26  ;;  %v2180_v26 = vrot.slane %v2119_v10, %v834_v20  ;;  %v2185_v27 = vrot.slane %v2119_v10, %v846_v25 }
 0x1a7   : > { %v1518_v12 = vpop.f32.mrb[0].mxu0 }
 0x1a8   : > { %v2130_v32 = vadd.f32 %v1518_v12, %v622_v30  ;;  %v729_v34 = vpop.f32.mrb[1].mxu0 }
 0x1a9   : > { %v2137_v35 = vadd.f32 %v729_v34, %v622_v30  ;;  %v1519_v13 = vpop.f32.mrb[2].mxu0 }
 0x1aa   : > { %v766_v36 = vmul.f32 %v2128_v31, %v2130_v32  ;;  %v2141_v37 = vadd.f32 %v1519_v13, %v622_v30  ;;  %v732_v38 = vpop.f32.mrb[3].mxu0 }
 0x1ab   : > { %v764_v39 = vmul.f32 %v2128_v31, %v2137_v35  ;;  %v2145_v41 = vadd.f32 %v732_v38, %v622_v30 }
 0x1ac   : > { %v778_v42 = vadd.f32 %v2135_v33, %v766_v36  ;;  %v767_v43 = vmul.f32 %v2128_v31, %v2141_v37 }
 0x1ad   : > { %v776_v44 = vadd.f32 %v2135_v33, %v764_v39  ;;  %v765_v46 = vmul.f32 %v2128_v31, %v2145_v41 }
 0x1ae   : > { %v1458_v47 = vmul.f32 -1.442695, %v778_v42  ;;  %v779_v48 = vadd.f32 %v2135_v33, %v767_v43 }
 0x1af   : > { %v1456_v49 = vmul.f32 -1.442695, %v776_v44  ;;  %v777_v50 = vadd.f32 %v2135_v33, %v765_v46 }
 0x1b0   : > { %1611 = vpow2.f32 %v1458_v47  ;;  %v1459_v52 = vmul.f32 -1.442695, %v779_v48 }
 0x1b1   : > { %1613 = vpow2.f32 %v1456_v49  ;;  %v1457_v53 = vmul.f32 -1.442695, %v777_v50 }
 0x1b2   : > { %1615 = vpow2.f32 %v1459_v52 }
 0x1b3   : > { %1617 = vpow2.f32 %v1457_v53 }
 0x1b7   : > { %v1522_v55 = vpop.f32.mrb[4].mxu0 }
 0x1b8   : > { %v2155_v40 = vadd.f32 %v1522_v55, %v622_v30  ;;  %v745_v45 = vpop.f32.mrb[5].mxu0 }
 0x1b9   : > { %v2157_v56 = vadd.f32 %v745_v45, %v622_v30  ;;  %v1523_v57 = vpop.f32.mrb[6].mxu0 }
 0x1ba   : > { %v1612_v58 = vpop.eup %1611  ;;  %v770_v59 = vmul.f32 %v2128_v31, %v2155_v40  ;;  %v2161_v60 = vadd.f32 %v1523_v57, %v622_v30  ;;  %v748_v61 = vpop.f32.mrb[7].mxu0 }
 0x1bb   : > { %v1614_v62 = vpop.eup %1613  ;;  %v810_v1 = vadd.f32 1.0, %v1612_v58  ;;  %v768_v2 = vmul.f32 %v2128_v31, %v2157_v56  ;;  %v2165_v3 = vadd.f32 %v748_v61, %v622_v30 }
 0x1bc   : > { %v1616_v5 = vpop.eup %1615  ;;  %v808_v51 = vadd.f32 1.0, %v1614_v62  ;;  %v782_v63 = vadd.f32 %v2135_v33, %v770_v59  ;;  %v771_v7 = vmul.f32 %v2128_v31, %v2161_v60 }
 0x1bd   : > { %v1618_v8 = vpop.eup %1617  ;;  %1619 = vrcp.f32 %v810_v1  ;;  %v811_v11 = vadd.f32 1.0, %v1616_v5  ;;  %v780_v14 = vadd.f32 %v2135_v33, %v768_v2  ;;  %v769_v15 = vmul.f32 %v2128_v31, %v2165_v3 }
 0x1be   : > { %1621 = vrcp.f32 %v808_v51  ;;  %v809_v16 = vadd.f32 1.0, %v1618_v8  ;;  %v1462_v6 = vmul.f32 -1.442695, %v782_v63  ;;  %v783_v18 = vadd.f32 %v2135_v33, %v771_v7 }
 0x1bf   : > { %1623 = vrcp.f32 %v811_v11  ;;  %v1460_v17 = vmul.f32 -1.442695, %v780_v14  ;;  %v781_v19 = vadd.f32 %v2135_v33, %v769_v15 }
 0x1c0   : > { %1625 = vrcp.f32 %v809_v16  ;;  %v1463_v21 = vmul.f32 -1.442695, %v783_v18 }
 0x1c1   : > { %1627 = vpow2.f32 %v1462_v6  ;;  %v1461_v22 = vmul.f32 -1.442695, %v781_v19 }
 0x1c2   : > { %1629 = vpow2.f32 %v1460_v17 }
 0x1c3   : > { %1631 = vpow2.f32 %v1463_v21  ;;  %v1786_v21 = vmov 0  }
 0x1c4   : > { %1633 = vpow2.f32 %v1461_v22  ;;  %1591 = vset.pattern.permute.xlu1 %v1786_v21  ;;  %1592 = vset.pattern.permute.xlu0 %v1786_v21  ;;  %v874_v22 = vsub.s32 1, %v1912_v4 }
 0x1c7   : > { %v1620_v23 = vpop.eup %1619 }
 0x1c8   : > { %v1622_v30 = vpop.eup %1621  ;;  %v838_v12 = vmul.f32 %v1620_v23, %v2180_v26 }
 0x1c9   : > { %v1624_v34 = vpop.eup %1623  ;;  %v836_v13 = vmul.f32 %v1622_v30, %v2180_v26 }
 0x1ca   : > { %v1626_v36 = vpop.eup %1625  ;;  %v850_v38 = vadd.f32 %v2185_v27, %v838_v12  ;;  %v839_v39 = vmul.f32 %v1624_v34, %v2180_v26 }
 0x1cb   : > { %v1628_v42 = vpop.eup %1627  ;;  %v848_v43 = vadd.f32 %v2185_v27, %v836_v13  ;;  %v837_v44 = vmul.f32 %v1626_v36, %v2180_v26 }
 0x1cc   : > { %v1630_v46 = vpop.eup %1629  ;;  %v851_v47 = vadd.f32 %v2185_v27, %v839_v39  ;;  %v814_v48 = vadd.f32 1.0, %v1628_v42  ;;  %v858_v55 = vmul.f32 %v850_v38, %v2130_v32 }
 0x1cd   : > { %v1632_v49 = vpop.eup %1631  ;;  %v849_v50 = vadd.f32 %v2185_v27, %v837_v44  ;;  %v812_v52 = vadd.f32 1.0, %v1630_v46  ;;  %v856_v58 = vmul.f32 %v848_v43, %v2137_v35 }
 0x1ce   : > { %v1634_v53 = vpop.eup %1633  ;;  %v859_v45 = vmul.f32 %v851_v47, %v2141_v37  ;;  %1635 = vrcp.f32 %v814_v48  ;;  %v815_v57 = vadd.f32 1.0, %v1632_v49 }
 0x1cf   : > { %v857_v59 = vmul.f32 %v849_v50, %v2145_v41  ;;  %1637 = vrcp.f32 %v812_v52  ;;  %v813_v61 = vadd.f32 1.0, %v1634_v53 }
 0x1d0   : > { %v865_v62 = vpack.c.bf16 %v859_v45, %v858_v55  ;;  %1639 = vrcp.f32 %v815_v57 }
 0x1d1   : > { %1641 = vrcp.f32 %v813_v61  ;;  %v864_v1 = vpack.c.bf16 %v857_v59, %v856_v58 }
 0x1d3   : > { %1528 = vmatprep.mubr.msk.bf16.mxu1 %vm544_vm0, %v864_v1 }
 0x1d4   : > { %1529 = vmatmul.mubr.msk.bf16.vlgmr.msra.gmra.mrb[0].mxu1 %vm544_vm0, %v865_v62 }
 0x1d8   : > { %v1636_v2 = vpop.eup %1635 }
 0x1d9   : > { %v1638_v32 = vpop.eup %1637  ;;  %v842_v37 = vmul.f32 %v1636_v2, %v2180_v26 }
 0x1da   : > { %v1640_v5 = vpop.eup %1639  ;;  %v840_v51 = vmul.f32 %v1638_v32, %v2180_v26 }
 0x1db   : > { %v1642_v35 = vpop.eup %1641  ;;  %v854_v41 = vadd.f32 %v2185_v27, %v842_v37  ;;  %v843_v63 = vmul.f32 %v1640_v5, %v2180_v26 }
 0x1dc   : > { %v852_v7 = vadd.f32 %v2185_v27, %v840_v51  ;;  %v841_v8 = vmul.f32 %v1642_v35, %v2180_v26 }
 0x1dd   : > { %v855_v11 = vadd.f32 %v2185_v27, %v843_v63  ;;  %v862_v15 = vmul.f32 %v854_v41, %v2155_v40  ;;  %v875_v40 = vrot.slane %v2119_v10, %v874_v22 }
 0x1de   : > { %v853_v14 = vadd.f32 %v2185_v27, %v841_v8  ;;  %v860_v6 = vmul.f32 %v852_v7, %v2157_v56 }
 0x1df   : > { %v863_v16 = vmul.f32 %v855_v11, %v2161_v60 }
 0x1e0   : > { %v861_v18 = vmul.f32 %v853_v14, %v2165_v3 }
 0x1e1   : > { %v867_v17 = vpack.c.bf16 %v863_v16, %v862_v15 }
 0x1e2   : > { %v866_v19 = vpack.c.bf16 %v861_v18, %v860_v6 }
 0x1e4   : > { %1532 = vmatprep.mubr.msk.bf16.mxu1 %vm544_vm0, %v866_v19 }
 0x1e5   : > { %1533 = vmatmul.mubr.msk.bf16.gmra.mrb[4].mxu1 %vm544_vm0, %v867_v17 }
 0x2a7   : > { %v1530_v60 = vpop.f32.mrb[0].mxu1 }
 0x2a8   : > { %v2219_v23 = vadd.f32 %v1530_v60, %v875_v40  ;;  %v934_v56 = vpop.f32.mrb[1].mxu1 }
 0x2a9   : > { %v2221_v3 = vadd.f32 %v934_v56, %v875_v40  ;;  %v1531_v30 = vpop.f32.mrb[2].mxu1 }
 0x2aa   : > { %v967_v12 = vmul.f32 %v2219_v23, %v2128_v31  ;;  %v2225_v34 = vadd.f32 %v1531_v30, %v875_v40  ;;  %v937_v13 = vpop.f32.mrb[3].mxu1 }
 0x2ab   : > { %v965_v36 = vmul.f32 %v2221_v3, %v2128_v31  ;;  %v2229_v38 = vadd.f32 %v937_v13, %v875_v40 }
 0x2ac   : > { %v975_v39 = vadd.f32 %v967_v12, %v2135_v33  ;;  %v968_v42 = vmul.f32 %v2225_v34, %v2128_v31 }
 0x2ad   : > { %v973_v43 = vadd.f32 %v965_v36, %v2135_v33  ;;  %v966_v44 = vmul.f32 %v2229_v38, %v2128_v31 }
 0x2ae   : > { %v1472_v46 = vmul.f32 -1.442695, %v975_v39  ;;  %v976_v47 = vadd.f32 %v968_v42, %v2135_v33 }
 0x2af   : > { %v1470_v48 = vmul.f32 -1.442695, %v973_v43  ;;  %v974_v49 = vadd.f32 %v966_v44, %v2135_v33 }
 0x2b0   : > { %1643 = vpow2.f32 %v1472_v46  ;;  %v1473_v50 = vmul.f32 -1.442695, %v976_v47 }
 0x2b1   : > { %1645 = vpow2.f32 %v1470_v48  ;;  %v1471_v52 = vmul.f32 -1.442695, %v974_v49 }
 0x2b2   : > { %1647 = vpow2.f32 %v1473_v50 }
 0x2b3   : > { %1649 = vpow2.f32 %v1471_v52 }
 0x2b8   : > { %v1534_v53 = vpop.f32.mrb[4].mxu1 }
 0x2b9   : > { %v2239_v55 = vadd.f32 %v1534_v53, %v875_v40  ;;  %v950_v45 = vpop.f32.mrb[5].mxu1 }
 0x2ba   : > { %v1644_v57 = vpop.eup %1643  ;;  %v2241_v58 = vadd.f32 %v950_v45, %v875_v40  ;;  %v1535_v59 = vpop.f32.mrb[6].mxu1 }
 0x2bb   : > { %v1646_v61 = vpop.eup %1645  ;;  %v1007_v62 = vadd.f32 1.0, %v1644_v57  ;;  %v971_v1 = vmul.f32 %v2239_v55, %v2128_v31  ;;  %v2245_v2 = vadd.f32 %v1535_v59, %v875_v40  ;;  %v953_v32 = vpop.f32.mrb[7].mxu1 }
 0x2bc   : > { %v1648_v37 = vpop.eup %1647  ;;  %v1005_v5 = vadd.f32 1.0, %v1646_v61  ;;  %v969_v51 = vmul.f32 %v2241_v58, %v2128_v31  ;;  %v2249_v35 = vadd.f32 %v953_v32, %v875_v40  ;;  %v1055_v40 = vsub.s32 6, %v1912_v4 }
 0x2bd   : > { %v1650_v41 = vpop.eup %1649  ;;  %1651 = vrcp.f32 %v1007_v62  ;;  %v1008_v63 = vadd.f32 1.0, %v1648_v37  ;;  %v979_v7 = vadd.f32 %v971_v1, %v2135_v33  ;;  %v972_v8 = vmul.f32 %v2245_v2, %v2128_v31 }
 0x2be   : > { %1653 = vrcp.f32 %v1005_v5  ;;  %v1006_v11 = vadd.f32 1.0, %v1650_v41  ;;  %v977_v14 = vadd.f32 %v969_v51, %v2135_v33  ;;  %v970_v15 = vmul.f32 %v2249_v35, %v2128_v31 }
 0x2bf   : > { %1655 = vrcp.f32 %v1008_v63  ;;  %v1476_v16 = vmul.f32 -1.442695, %v979_v7  ;;  %v980_v6 = vadd.f32 %v972_v8, %v2135_v33  ;;  %v1056_v39 = vrot.slane %v2119_v10, %v1055_v40 }
 0x2c0   : > { %1657 = vrcp.f32 %v1006_v11  ;;  %v1474_v18 = vmul.f32 -1.442695, %v977_v14  ;;  %v978_v17 = vadd.f32 %v970_v15, %v2135_v33 }
 0x2c1   : > { %1659 = vpow2.f32 %v1476_v16  ;;  %v1477_v19 = vmul.f32 -1.442695, %v980_v6 }
 0x2c2   : > { %1661 = vpow2.f32 %v1474_v18  ;;  %v1475_v21 = vmul.f32 -1.442695, %v978_v17 }
 0x2c3   : > { %1663 = vpow2.f32 %v1477_v19 }
 0x2c4   : > { %1665 = vpow2.f32 %v1475_v21 }
 0x2c7   : > { %v1652_v60 = vpop.eup %1651 }
 0x2c8   : > { %v1654_v56 = vpop.eup %1653  ;;  %v1031_v31 = vmul.f32 %v1652_v60, %v2180_v26 }
 0x2c9   : > { %v1656_v30 = vpop.eup %1655  ;;  %v1029_v12 = vmul.f32 %v1654_v56, %v2180_v26 }
 0x2ca   : > { %v1658_v13 = vpop.eup %1657  ;;  %v1039_v36 = vadd.f32 %v1031_v31, %v2185_v27  ;;  %v1032_v33 = vmul.f32 %v1656_v30, %v2180_v26 }
 0x2cb   : > { %v1660_v42 = vpop.eup %1659  ;;  %v1037_v43 = vadd.f32 %v1029_v12, %v2185_v27  ;;  %v1030_v44 = vmul.f32 %v1658_v13, %v2180_v26 }
 0x2cc   : > { %v1662_v46 = vpop.eup %1661  ;;  %v1047_v47 = vmul.f32 %v1039_v36, %v2219_v23  ;;  %v1040_v48 = vadd.f32 %v1032_v33, %v2185_v27  ;;  %v1011_v49 = vadd.f32 1.0, %v1660_v42 }
 0x2cd   : > { %v1664_v50 = vpop.eup %1663  ;;  %v1045_v52 = vmul.f32 %v1037_v43, %v2221_v3  ;;  %v1038_v53 = vadd.f32 %v1030_v44, %v2185_v27  ;;  %v1009_v45 = vadd.f32 1.0, %v1662_v46 }
 0x2ce   : > { %v1666_v57 = vpop.eup %1665  ;;  %1667 = vrcp.f32 %v1011_v49  ;;  %v1012_v10 = vadd.f32 1.0, %v1664_v50  ;;  %v1059_v59 = vmul.f32 %v1056_v39, %v1047_v47  ;;  %v1048_v1 = vmul.f32 %v1040_v48, %v2225_v34 }
 0x2cf   : > { %v1046_v61 = vmul.f32 %v1038_v53, %v2229_v38  ;;  %1669 = vrcp.f32 %v1009_v45  ;;  %v1010_v62 = vadd.f32 1.0, %v1666_v57  ;;  %v1057_v32 = vmul.f32 %v1056_v39, %v1045_v52 }
 0x2d0   : > { %1671 = vrcp.f32 %v1012_v10  ;;  %v1071_v23 = vsel %vm544_vm0, %v1059_v59, 0.0  ;;  %v1060_v51 = vmul.f32 %v1056_v39, %v1048_v1 }
 0x2d1   : > { %1673 = vrcp.f32 %v1010_v62  ;;  %1072 = vadd.xlane.f32.xlu0 %v1071_v23  ;;  %v1058_v3 = vmul.f32 %v1056_v39, %v1046_v61  ;;  %v1065_v5 = vsel %vm544_vm0, %v1057_v32, 0.0 }
 0x2d2   : > { %v1074_v38 = vsel %vm544_vm0, %v1060_v51, 0.0 }
 0x2d3   : > { %v1068_v37 = vsel %vm544_vm0, %v1058_v3, 0.0 }
 0x2d4   : > { %1069 = vadd.xlane.f32.xlu1 %v1068_v37 }
 0x2d5   : > { %1066 = vadd.xlane.f32.xlu0 %v1065_v5 }
 0x2d8   : > { %v1668_v41 = vpop.eup %1667 }
 0x2d9   : > { %v1670_v63 = vpop.eup %1669  ;;  %v1035_v34 = vmul.f32 %v1668_v41, %v2180_v26  ;;  %1075 = vadd.xlane.f32.xlu0 %v1074_v38 }
 0x2da   : > { %v1672_v7 = vpop.eup %1671  ;;  %v1033_v8 = vmul.f32 %v1670_v63, %v2180_v26 }
 0x2db   : > { %v1674_v11 = vpop.eup %1673  ;;  %v1043_v14 = vadd.f32 %v1035_v34, %v2185_v27  ;;  %v1036_v15 = vmul.f32 %v1672_v7, %v2180_v26 }
 0x2dc   : > { %v1041_v16 = vadd.f32 %v1033_v8, %v2185_v27  ;;  %v1034_v6 = vmul.f32 %v1674_v11, %v2180_v26 }
 0x2dd   : > { %v1051_v18 = vmul.f32 %v1043_v14, %v2239_v55  ;;  %v1044_v17 = vadd.f32 %v1036_v15, %v2185_v27 }
 0x2de   : > { %v1049_v19 = vmul.f32 %v1041_v16, %v2241_v58  ;;  %v1042_v21 = vadd.f32 %v1034_v6, %v2185_v27  ;;  %v1089_v27 = vld [vmem:[%s298_s20] sm:$0xff] }
 0x2df   : > { %v1063_v60 = vmul.f32 %v1056_v39, %v1051_v18  ;;  %v1052_v56 = vmul.f32 %v1044_v17, %v2245_v2 }
 0x2e0   : > { %v1050_v31 = vmul.f32 %v1042_v21, %v2249_v35  ;;  %v1061_v12 = vmul.f32 %v1056_v39, %v1049_v19  ;;  %v1091_v35 = vand.u32 127, %v315_v0 }
 0x2e1   : > { %v1083_v30 = vsel %vm544_vm0, %v1063_v60, 0.0  ;;  %v1064_v55 = vmul.f32 %v1056_v39, %v1052_v56  ;;  %v1218_v60 = vsub.s32 7, %v1912_v4 }
 0x2e2   : > { %1084 = vadd.xlane.f32.xlu1 %v1083_v30  ;;  %v1062_v13 = vmul.f32 %v1056_v39, %v1050_v31  ;;  %v1077_v36 = vsel %vm544_vm0, %v1061_v12, 0.0  ;;  %v1108_v39 = vsub.s32 %v1091_v35, %v1912_v4  ;;  %v1680_v30 = vld [vmem:[%s1917_s13] sm:$0xf] }
 0x2e3   : > { %v1086_v58 = vsel %vm544_vm0, %v1064_v55, 0.0  ;;  %v1223_v12 = vunpack.c.l.bf16 %v1680_v30 }
 0x2e4   : > { %v1080_v26 = vsel %vm544_vm0, %v1062_v13, 0.0 }
 0x2e5   : > { %1081 = vadd.xlane.f32.xlu0 %v1080_v26 }
 0x2e6   : > { %1078 = vadd.xlane.f32.xlu1 %v1077_v36  ;;  %v1681_v36 = vld [vmem:[%s1917_s13 + $0x8] sm:$0xf] }
 0x2e9   : > { %1087 = vadd.xlane.f32.xlu0 %v1086_v58  ;;  %v1225_v58 = vunpack.c.l.bf16 %v1681_v36 }
 0x2f7   : > { %1093 = vperm.xlu1 %1591, %v1089_v27   ;;  %v1682_v27 = vld [vmem:[%s1917_s13 + $0x14] sm:$0xf] }
 0x35e   : > { %v1073_v2 = vpop.xlane.xlu0 %1072 }
 0x35f   : > { %v1117_v50 = vrot.slane %v1073_v2, %v1108_v39  ;;  %v1228_v2 = vunpack.c.l.bf16 %v1682_v27 }
 0x361   : > { %v1070_v42 = vpop.xlane.xlu1 %1069 }
 0x362   : > { %v1067_v33 = vpop.xlane.xlu0 %1066  ;;  %v1113_v43 = vrot.slane %v1070_v42, %v1108_v39 }
 0x363   : > { %v1109_v44 = vrot.slane %v1067_v33, %v1108_v39 }
 0x365   : > { %v1139_v48 = vsel %vm1138_vm3, %v1113_v43, %v1109_v44  ;;  %v1683_v44 = vld [vmem:[%s1917_s13 + $0xc] sm:$0xf] }
 0x366   : > { %v1076_v46 = vpop.xlane.xlu0 %1075  ;;  %v1141_v0 = vsel %vm1140_vm4, %v1117_v50, %v1139_v48 }
 0x367   : > { %v1121_v49 = vrot.slane %v1076_v46, %v1108_v39  ;;  %v1226_v46 = vunpack.c.l.bf16 %v1683_v44 }
 0x369   : > { %v1143_v57 = vsel %vm1142_vm5, %v1121_v49, %v1141_v0 }
 0x36f   : > { %v1085_v47 = vpop.xlane.xlu1 %1084 }
 0x370   : > { %v1133_v62 = vrot.slane %v1085_v47, %v1108_v39  ;;  %v1230_v47 = vunpack.c.l.bf16 %v2004_v54 }
 0x372   : > { %v1082_v52 = vpop.xlane.xlu0 %1081 }
 0x373   : > { %v1079_v53 = vpop.xlane.xlu1 %1078  ;;  %v1129_v10 = vrot.slane %v1082_v52, %v1108_v39 }
 0x374   : > { %v1125_v45 = vrot.slane %v1079_v53, %v1108_v39 }
 0x376   : > { %v1145_v59 = vsel %vm1144_vm6, %v1125_v45, %v1143_v57  ;;  %v1088_v61 = vpop.xlane.xlu0 %1087 }
 0x377   : > { %v1147_v1 = vsel %vm1146_vm7, %v1129_v10, %v1145_v59  ;;  %v1094_v23 = vpop.permute.xlu1 %1093  ;;  %v1137_v32 = vrot.slane %v1088_v61, %v1108_v39 }
 0x378   : > { %v1095_v3 = vshra.s32 %v1094_v23, %v1091_v35  ;;  %v1149_v37 = vsel %vm1148_vm8, %v1133_v62, %v1147_v1  ;;  %v1684_v1 = vld [vmem:[%s1917_s13 + $0x10] sm:$0xf] }
 0x379   : > { %v1151_v51 = vsel %vm1150_vm9, %v1137_v32, %v1149_v37  ;;  %v1227_v23 = vunpack.c.l.bf16 %v1684_v1 }
 0x37a   : > { %v1096_v5 = vand.u32 1, %v1095_v3 }
 0x37c   : > { %vm1097_vm10 = vcmp.gt.s32.totalorder %v1096_v5, 0 }
 0x37d   : > { %v1153_v41 = vsel %vm1097_vm10, %v1151_v51, -1e+12 }
 0x37e   : > { %v1154_v38 = vmul.f32 0.17677669, %v1153_v41 }
 0x380   : > { %v1156_v63 = vsel %vm1155_vm11, %v1154_v38, -inf }
 0x381   : > { %1157 = vmax.xlane.f32.xlu0 %v1156_v63 }
 0x40e   : > { %v1158_v34 = vpop.xlane.xlu0 %1157 }
 0x40f   : > { %v1159_v7 = vsub.f32 %v1154_v38, %v1158_v34  ;;  %v1229_v38 = vunpack.c.l.bf16 %v2028_v9 }
 0x411   : > { %v1160_v8 = vmul.f32 1.442695, %v1159_v7 }
 0x413   : > { %1675 = vpow2.f32 %v1160_v8 }
 0x41d   : > { %v1676_v11 = vpop.eup %1675 }
 0x41e   : > { %v1162_v14 = vsel %vm1155_vm11, %v1676_v11, 0.0 }
 0x41f   : > { %1163 = vadd.xlane.f32.xlu0 %v1162_v14 }
 0x4ac   : > { %v1164_v15 = vpop.xlane.xlu0 %1163 }
 0x4ad   : > { %1677 = vrcp.f32 %v1164_v15 }
 0x4b7   : > { %v1678_v16 = vpop.eup %1677 }
 0x4b8   : > { %v1166_v6 = vmul.f32 %v1678_v16, %v1676_v11 }
 0x4ba   : > { %v1177_v18 = vrot.slane %v1166_v6, %v874_v22  ;;  %v1170_v17 = vrot.slane %v1166_v6, %v1967_v24  ;;  %v1184_v19 = vrot.slane %v1166_v6, %v846_v25  ;;  %v1205_v21 = vrot.slane %v1166_v6, %v774_v29  ;;  %v1679_v29 = vld [vmem:[%s1917_s13 + $0x4] sm:$0xf]  ;;  %s1427_s13 = sshll.u32 %s282_s10, 3 }
 0x4bb   : > { %v1191_v56 = vrot.slane %v1166_v6, %v834_v20  ;;  %v1219_v22 = vrot.slane %v1166_v6, %v1218_v60  ;;  %v1198_v24 = vrot.slane %v1166_v6, %v762_v28  ;;  %v1212_v25 = vrot.slane %v1166_v6, %v1055_v40  ;;  %s284_s26 = scalar_lea.vmem [#allocation5], %s1427_s13 }
 0x4bc   : > { %1179 = vbcast.lane.b32.xlu1 %v1177_v18, 256  ;;  %1172 = vbcast.lane.b32.xlu0 %v1170_v17, 256  ;;  %v1224_v31 = vunpack.c.l.bf16 %v1679_v29  ;;  %s1326_s28 = sshll.u32 %s284_s26, 4  ;;  %s2354_s28 = int_to_ptr.vmem [resolvable:$true] %s1326_s28 }
 0x4bd   : > { %s1713_s18 = scalar_lea.vmem %s2354_s28, 128  ;;  %p1720_p3 = scmp.lt.s32.totalorder %s2354_s28, %s1718_s15 }
 0x4be   : > { %p1714_p9 = scmp.ne.s32.totalorder %s2354_s28, %s1713_s18  ;;  %p1721_p4 = scmp.lt.s32.totalorder %s1719_s16, %s1713_s18 }
 0x4c0   : > { %1186 = vbcast.lane.b32.xlu1 %v1184_v19, 256  ;;  %1207 = vbcast.lane.b32.xlu0 %v1205_v21, 256  ;;  %p1715_p12 = pnand %p1714_p9, %p2415_p10  ;;  %p1722_p7 = por %p1721_p4, %p1720_p3 }
 0x4c2   : > { %p1716_p2 = pneg %p1715_p12 }
 0x4c4   : > { %1193 = vbcast.lane.b32.xlu1 %v1191_v56, 256  ;;  %1221 = vbcast.lane.b32.xlu0 %v1219_v22, 256  ;;  %p1723_p8 = pnand %p1722_p7, %p1716_p2 }
 0x4c8   : > { %1200 = vbcast.lane.b32.xlu1 %v1198_v24, 256 }
 0x4cc   : > { %1214 = vbcast.lane.b32.xlu1 %v1212_v25, 256 }
 0x52e   : > { %v1180_v13 = vpop.permute.xlu1 %1179  ;;  %v1173_v20 = vpop.permute.xlu0 %1172 }
 0x52f   : > { %v1232_v26 = vmul.f32 %v1224_v31, %v1180_v13  ;;  %v1231_v55 = vmul.f32 %v1223_v12, %v1173_v20 }
 0x531   : > { %v1246_v28 = vsel %vm544_vm0, %v1232_v26, 0.0  ;;  %v1239_v35 = vsel %vm544_vm0, %v1231_v55, 0.0 }
 0x532   : > { %v1247_v4 = vrot.slane %v1246_v28, 4  ;;  %v1240_v40 = vrot.slane %v1239_v35, 4  ;;  %v1187_v33 = vpop.permute.xlu1 %1186  ;;  %v1208_v42 = vpop.permute.xlu0 %1207 }
 0x533   : > { %v1233_v39 = vmul.f32 %v1225_v58, %v1187_v33  ;;  %v1236_v43 = vmul.f32 %v1228_v2, %v1208_v42 }
 0x534   : > { %v1248_v48 = vadd.f32 %v1247_v4, %v1246_v28  ;;  %v1241_v49 = vadd.f32 %v1240_v40, %v1239_v35 }
 0x535   : > { %v1253_v50 = vsel %vm544_vm0, %v1233_v39, 0.0  ;;  %v1274_v52 = vsel %vm544_vm0, %v1236_v43, 0.0 }
 0x536   : > { %v1249_v53 = vrot.slane %v1248_v48, 2  ;;  %v1242_v0 = vrot.slane %v1241_v49, 2  ;;  %v1254_v45 = vrot.slane %v1253_v50, 4  ;;  %v1194_v57 = vpop.permute.xlu1 %1193  ;;  %v1222_v10 = vpop.permute.xlu0 %1221  ;;  %v1275_v59 = vrot.slane %v1274_v52, 4 }
 0x537   : > { %v1234_v61 = vmul.f32 %v1226_v46, %v1194_v57  ;;  %v1238_v62 = vmul.f32 %v1230_v47, %v1222_v10 }
 0x538   : > { %v1255_v32 = vadd.f32 %v1254_v45, %v1253_v50  ;;  %v1250_v37 = vadd.f32 %v1249_v53, %v1248_v48  ;;  %v1243_v5 = vadd.f32 %v1242_v0, %v1241_v49  ;;  %v1276_v63 = vadd.f32 %v1275_v59, %v1274_v52 }
 0x539   : > { %v1260_v3 = vsel %vm544_vm0, %v1234_v61, 0.0  ;;  %v1288_v54 = vsel %vm544_vm0, %v1238_v62, 0.0 }
 0x53a   : > { %v1256_v51 = vrot.slane %v1255_v32, 2  ;;  %v1201_v41 = vpop.permute.xlu1 %1200  ;;  %v1261_v34 = vrot.slane %v1260_v3, 4  ;;  %v1289_v7 = vrot.slane %v1288_v54, 4  ;;  %v1251_v6 = vrot.slane %v1250_v37, 1 }
 0x53b   : > { %v1235_v8 = vmul.f32 %v1227_v23, %v1201_v41  ;;  %v1244_v19 = vrot.slane %v1243_v5, 1  ;;  %v1277_v21 = vrot.slane %v1276_v63, 2 }
 0x53c   : > { %v1257_v11 = vadd.f32 %v1256_v51, %v1255_v32  ;;  %v1262_v14 = vadd.f32 %v1261_v34, %v1260_v3  ;;  %v1290_v15 = vadd.f32 %v1289_v7, %v1288_v54  ;;  %v1252_v12 = vadd.f32 %v1251_v6, %v1250_v37 }
 0x53d   : > { %v1267_v16 = vsel %vm544_vm0, %v1235_v8, 0.0  ;;  %v1245_v13 = vadd.f32 %v1244_v19, %v1243_v5  ;;  %v1278_v20 = vadd.f32 %v1277_v21, %v1276_v63 }
 0x53e   : > { %v1268_v18 = vrot.slane %v1267_v16, 4  ;;  %v1215_v17 = vpop.permute.xlu1 %1214  ;;  %v1263_v60 = vrot.slane %v1262_v14, 2  ;;  %v1258_v22 = vrot.slane %v1257_v11, 1  ;;  %v1291_v25 = vrot.slane %v1290_v15, 2 }
 0x53f   : > { %v1237_v56 = vmul.f32 %v1229_v38, %v1215_v17  ;;  %v1303_v4 = vsel %vm1138_vm3, %v1252_v12, %v1245_v13  ;;  %v1279_v40 = vrot.slane %v1278_v20, 1 }
 0x540   : > { %v1269_v24 = vadd.f32 %v1268_v18, %v1267_v16  ;;  %v1264_v9 = vadd.f32 %v1263_v60, %v1262_v14  ;;  %v1259_v55 = vadd.f32 %v1258_v22, %v1257_v11  ;;  %v1292_v2 = vadd.f32 %v1291_v25, %v1290_v15 }
 0x541   : > { %v1281_v29 = vsel %vm544_vm0, %v1237_v56, 0.0  ;;  %v1280_v48 = vadd.f32 %v1279_v40, %v1278_v20 }
 0x542   : > { %v1270_v31 = vrot.slane %v1269_v24, 2  ;;  %v1282_v30 = vrot.slane %v1281_v29, 4  ;;  %v1265_v26 = vrot.slane %v1264_v9, 1  ;;  %v1304_v33 = vsel %vm1140_vm4, %v1259_v55, %v1303_v4 }
 0x543   : > { %v1293_v44 = vrot.slane %v1292_v2, 1 }
 0x544   : > { %v1271_v36 = vadd.f32 %v1270_v31, %v1269_v24  ;;  %v1283_v58 = vadd.f32 %v1282_v30, %v1281_v29  ;;  %v1266_v27 = vadd.f32 %v1265_v26, %v1264_v9 }
 0x545   : > { %v1294_v50 = vadd.f32 %v1293_v44, %v1292_v2 }
 0x546   : > { %v1272_v28 = vrot.slane %v1271_v36, 1  ;;  %v1284_v35 = vrot.slane %v1283_v58, 2  ;;  %v1305_v43 = vsel %vm1142_vm5, %v1266_v27, %v1304_v33 }
 0x548   : > { %v1273_v42 = vadd.f32 %v1272_v28, %v1271_v36  ;;  %v1285_v39 = vadd.f32 %v1284_v35, %v1283_v58 }
 0x54a   : > { %v1306_v46 = vsel %vm1144_vm6, %v1273_v42, %v1305_v43  ;;  %v1286_v47 = vrot.slane %v1285_v39, 1 }
 0x54b   : > { %v1307_v52 = vsel %vm1146_vm7, %v1280_v48, %v1306_v46 }
 0x54c   : > { %v1287_v49 = vadd.f32 %v1286_v47, %v1285_v39 }
 0x54e   : > { %v1308_v53 = vsel %vm1148_vm8, %v1287_v49, %v1307_v52 }
 0x54f   : > { %v1309_v0 = vsel %vm1150_vm9, %v1294_v50, %v1308_v53 }
 0x550   : > { %1311 = vst.msk [vmem:[%s284_s26] sm:$0xff] %vm544_vm0, %v1309_v0 }
 0x551   : > { %1726 = shalt.err (!%p1723_p8)
}
 0x552   : > { %s1727_s17 = scalar_lea.hbm %s2352_s11, 128  ;;  %s1731_s10 = scalar_lea.hbm %s2404_s6, 256 }
 0x553   : > { %p1728_p11 = scmp.ne.s32.totalorder %s2352_s11, %s1727_s17  ;;  %p1732_p0 = scmp.lt.u32.totalorder %s2352_s11, %s2404_s6 }
 0x554   : > { %p1733_p5 = scmp.lt.u32.totalorder %s1731_s10, %s1727_s17  ;;  %p1735_p9 = scmp.lt.u32.totalorder %s1727_s17, %s2352_s11 }
 0x555   : > { %p1729_p13 = pnand %p1728_p11, %p2415_p10 }
 0x556   : > { %p1734_p6 = por %p1733_p5, %p1732_p0 }
 0x557   : > { %p1730_p1 = pneg %p1729_p13 }
 0x558   : > { %p1736_p12 = por %p1735_p9, %p1734_p6 }
 0x55a   : > { %p1737_p2 = pnand %p1736_p12, %p1730_p1 }
 0x55c   : > { %1740 = shalt.err (!%p1737_p2)
}
 0x55d   : > { %1540 = dma.vmem_to_hbm [thread:$0]  (%p2415_p10), %s2354_s28, 128, %s2352_s11, %s1313_s25  }
 0x55e PF: > { %p1552_p3 = scmp.ge.s32.totalorder %s1779_s24, 2  ;;  %s1338_s26 = sand.u32 1, %s1767_s21  }
 0x55f   : > { %p2416_p4 = scmp.ne.s32.totalorder %s2409_s8, 0  ;;  %s1339_s29 = scalar_lea.sflag [#allocation4], %s1338_s26 }
 0x561   : > { %p1547_p7 = pnand %p1552_p3, %p2416_p4 }
 0x563   : > { %1762 = dma.done.wait (!%p1547_p7), %s1339_s29, 128  }
 0x564   : > { %1764 = vsyncadd (!%p1547_p7), %s1339_s29, 4294967168  ;;  %p17_p8 = scmp.ge.s32.totalorder %s1848_s27, 4   ;;  %s2417_s21 = smov %s1771_s22 }
 0x565   : > { %s2418_s22 = smov %s1775_s23  ;;  %s2419_s23 = smov %s1859_s30 }
 0x566   : > { %s2420_s24 = smov %s1848_s27  ;;  %19 = sbr.rel (!%p17_p8) target bundleno = 4 (0x4), region = 90 }
 0x56d   :  { %1344 = vsyncpa [#allocation3], 1 }
 0x56e   :  { %1346 = vsyncpa [#allocation3 + $0x1], 1 }
 0x56f   :  { %1347 = vsyncpa [#allocation4], 1 }
 0x570   :  { %1349 = vsyncpa [#allocation4 + $0x1], 1 }

</bundles_post_ra>
